<compile_context>
chip_gen: v5e
topology: v5e:2x2
jax: 0.10.0
libtpu: 0.0.40
codegen_flags: <defaults>
</compile_context>

<pallas_src>
import jax
import jax.numpy as jnp
from jax.experimental import pallas as pl
from jax.experimental.pallas import tpu as pltpu


def _round_up(x, m):
    return ((x + m - 1) // m) * m


def prepare_expert_constants(params, *, batch_size, matmul_dtype=jnp.float32):
    """Precompute all parameter-derived operands once (hoisted out of forward).

    Returns packed weight/vector slabs + static dims.  batch_size is needed
    because the augmented reduction width K_aug = round_up(H + B, 16).
    """
    f32 = jnp.float32
    md = matmul_dtype

    w1 = params["w1"].astype(f32)   # (Dt, Gh)
    w2 = params["w2"].astype(f32)   # (Gh, Gh2)
    w3 = params["w3"].astype(f32)   # (Gh2, E)
    wi = params["wi"].astype(f32)   # (H, Dexp)
    wo = params["wo"].astype(f32)   # (Dexp, H)
    ev = params["ev"].astype(f32)   # (E, Dexp)

    Dt, Gh = w1.shape
    Gh2 = w2.shape[1]
    E = w3.shape[1]
    H = wi.shape[0]
    B = batch_size
    KA = _round_up(H + B, 16)       # augmented reduction width (sublane multiple)

    assert max(Gh, Gh2, E, H) <= 128, "packed-vector slab assumes widths <= 128 lanes"

    # Exact algebraic fusions (no nonlinearity between the projections):
    #   out = (hs @ Wi + bi + mixed) @ Wo + bo
    #       = hs @ (Wi @ Wo) + (ew @ ev) @ Wo + (bi @ Wo + bo)
    #       = hs @ wio       + ew @ evo        + c
    wio = wi @ wo                                                        # (H, H)
    evo = ev @ wo                                                        # (E, H)
    c = params["bi"].astype(f32) @ wo + params["bo"].astype(f32)         # (1, H)

    # --- packed gating-weight slab: rows [w1 | w2 | w3], zero-padded lanes ---
    gw_cols = max(Gh, Gh2, E)
    gate = jnp.zeros((Dt + Gh + Gh2, gw_cols), f32)
    gate = gate.at[0:Dt, 0:Gh].set(w1)
    gate = gate.at[Dt:Dt + Gh, 0:Gh2].set(w2)
    gate = gate.at[Dt + Gh:Dt + Gh + Gh2, 0:E].set(w3)
    gate = gate.astype(md)

    # --- packed projection slab: rows [wio padded to KA | evo] ---
    proj = jnp.zeros((KA + E, H), f32)
    proj = proj.at[0:H, :].set(wio)
    proj = proj.at[KA:KA + E, :].set(evo)
    proj = proj.astype(md)

    # --- packed small-vector slab (one (8,128) f32 tile, one DMA) ---
    vec = jnp.zeros((8, 128), f32)
    vec = vec.at[0, 0:Gh].set(params["b1"].astype(f32).reshape(-1))
    vec = vec.at[1, 0:Gh2].set(params["b2"].astype(f32).reshape(-1))
    vec = vec.at[2, 0:E].set(params["b3"].astype(f32).reshape(-1))
    vec = vec.at[3, 0:H].set(c.reshape(-1))
    vec = vec.at[4, 0:H].set(params["gamma"].astype(f32).reshape(-1))
    vec = vec.at[5, 0:H].set(params["beta"].astype(f32).reshape(-1))

    dims = dict(B=B, H=H, Dt=Dt, Gh=Gh, Gh2=Gh2, E=E, KA=KA)
    return dict(gate=gate, proj=proj, vec=vec, dims=dims, matmul_dtype=md)


def expert_system_forward(hidden_states, task_embedding, consts):
    """hidden_states: [B, S, H] f32; task_embedding: [B, Dt] f32.

    consts: output of prepare_expert_constants (param-derived, precomputed once).
    Matmul operands run in consts['matmul_dtype']; accumulation, softmax,
    residual and LayerNorm always run in f32.
    """
    f32 = jnp.float32
    d = consts["dims"]
    md = consts["matmul_dtype"]
    B, S, H = hidden_states.shape
    assert B == d["B"] and H == d["H"]
    Dt, Gh, Gh2, E, KA = d["Dt"], d["Gh"], d["Gh2"], d["E"], d["KA"]
    BS = B * S

    # Augmented activation slab: [hs | one_hot(row->batch) | zero pad] so the
    # per-batch broadcast is absorbed into the single sequence matmul.
    hs2d = hidden_states.astype(f32).reshape(BS, H)                      # free reshape
    onehot = jnp.repeat(jnp.eye(B, dtype=f32), S, axis=0)                # (BS, B)
    pad = jnp.zeros((BS, KA - H - B), f32)
    hs_aug = jnp.concatenate([hs2d, onehot, pad], axis=1)                # (BS, KA)
    te = task_embedding.astype(f32)

    def kernel(te_ref, hsa_ref, gw_ref, pw_ref, vec_ref, out_ref, w_aug_ref):
        # ---- unpack the single packed small-vector slab (static slices) ----
        b1 = vec_ref[0:1, 0:Gh]
        b2 = vec_ref[1:2, 0:Gh2]
        b3 = vec_ref[2:3, 0:E]
        cc = vec_ref[3:4, 0:H]          # bi @ Wo + bo (pre-fused)
        gamma = vec_ref[4:5, 0:H]
        beta = vec_ref[5:6, 0:H]

        # ---- gating MLP + softmax on all B rows at once ----
        te_v = te_ref[...].astype(md)
        h1 = jnp.maximum(
            jnp.dot(te_v, gw_ref[0:Dt, 0:Gh],
                    preferred_element_type=jnp.float32) + b1, 0.0)
        h2 = jnp.maximum(
            jnp.dot(h1.astype(md), gw_ref[Dt:Dt + Gh, 0:Gh2],
                    preferred_element_type=jnp.float32) + b2, 0.0)
        logits = jnp.dot(h2.astype(md), gw_ref[Dt + Gh:Dt + Gh + Gh2, 0:E],
                         preferred_element_type=jnp.float32) + b3
        mx = jnp.max(logits, axis=-1, keepdims=True)
        ex = jnp.exp(logits - mx)
        # approx reciprocal runs on the EUP slot (~free); ~1e-3 relative error
        # vs an exact softmax — documented, covered by the test tolerances.
        ew = ex * pl.reciprocal(jnp.sum(ex, axis=-1, keepdims=True), approx=True)

        # ---- expert mixing, folded through the (pre-fused) output projection ----
        # mixed_h = (ew @ ev) @ Wo == ew @ evo   (exact).  In the bf16 path the
        # softmax weights are cast to bf16 here (compounds slightly with the
        # approx reciprocal; within the stated tolerances).
        mixed_h = jnp.dot(ew.astype(md), pw_ref[KA:KA + E, :],
                          preferred_element_type=jnp.float32)            # (B, H)

        # ---- single augmented MXU push for the sequence matmul ----
        #   hs_aug @ W_aug = hs @ (Wi Wo) + one_hot @ mixed_h
        w_aug_ref[...] = pw_ref[0:KA, :]            # wio rows + zero tail (covers pad rows)
        w_aug_ref[H:H + B, :] = mixed_h.astype(md)  # one-hot columns pick the right batch
        hsa = hsa_ref[...]                          # (BS, KA) f32
        out = jnp.dot(hsa.astype(md), w_aug_ref[...],
                      preferred_element_type=jnp.float32) + cc           # (BS, H)

        # ---- residual + two-pass LayerNorm (eps = 1e-5), all in f32 ----
        hs = hsa[:, 0:H]
        y = hs + out
        mu = jnp.mean(y, axis=-1, keepdims=True)
        dlt = y - mu
        var = jnp.mean(dlt * dlt, axis=-1, keepdims=True)
        yn = dlt * jax.lax.rsqrt(var + 1e-5)
        out_ref[...] = (yn * gamma + beta).astype(out_ref.dtype)

    operands = (te, hs_aug, consts["gate"], consts["proj"], consts["vec"])

    def full_spec(a):
        nd = a.ndim
        return pl.BlockSpec(a.shape, lambda i, nd=nd: (0,) * nd)

    out2d = pl.pallas_call(
        kernel,
        out_shape=jax.ShapeDtypeStruct((BS, H), f32),
        grid_spec=pltpu.PrefetchScalarGridSpec(
            num_scalar_prefetch=0,
            grid=(1,),                 # single fused step: everything is tiny & resident
            in_specs=[full_spec(a) for a in operands],
            out_specs=pl.BlockSpec((BS, H), lambda i: (0, 0)),
            scratch_shapes=[pltpu.VMEM((KA, H), md)],     # augmented weight W_aug
        ),
        compiler_params=pltpu.CompilerParams(
            dimension_semantics=("arbitrary",),
            vmem_limit_bytes=32 * 1024 * 1024,
        ),
    )(*operands)

    return out2d.reshape(B, S, H)


def reference_forward(hidden_states, task_embedding, p):
    h1 = jnp.maximum(task_embedding @ p["w1"] + p["b1"], 0.0)
    h2 = jnp.maximum(h1 @ p["w2"] + p["b2"], 0.0)
    logits = h2 @ p["w3"] + p["b3"]
    ew = jax.nn.softmax(logits, axis=-1)
    proj = hidden_states @ p["wi"] + p["bi"]
    mixed = ew @ p["ev"]
    adapted = proj + mixed[:, None, :]
    out = adapted @ p["wo"] + p["bo"]
    y = hidden_states + out
    mu = jnp.mean(y, axis=-1, keepdims=True)
    var = jnp.mean((y - mu) ** 2, axis=-1, keepdims=True)
    yn = (y - mu) * jax.lax.rsqrt(var + 1e-5)
    return yn * p["gamma"] + p["beta"]


if __name__ == "__main__":
    # Small config consistent with the module's forward:
    #   batch=2, seq=8, hidden_size=32, task_embedding_dim=64,
    #   gating_hidden_dim=64 (-> 32), num_experts=8, expert_dim=64.
    B, S, H = 2, 8, 32
    Dt, Gh, E, Dexp = 64, 64, 8, 64
    Gh2 = Gh // 2

    key = jax.random.PRNGKey(0)
    ks = jax.random.split(key, 16)

    params = {
        # gating MLP (weights stored as (in, out))
        "w1": jax.random.normal(ks[0], (Dt, Gh), jnp.float32) * 0.05,
        "b1": jax.random.normal(ks[1], (1, Gh), jnp.float32) * 0.01,
        "w2": jax.random.normal(ks[2], (Gh, Gh2), jnp.float32) * 0.05,
        "b2": jax.random.normal(ks[3], (1, Gh2), jnp.float32) * 0.01,
        "w3": jax.random.normal(ks[4], (Gh2, E), jnp.float32) * 0.05,
        "b3": jax.random.normal(ks[5], (1, E), jnp.float32) * 0.01,
        # expert vectors + projections
        "ev": jax.random.normal(ks[6], (E, Dexp), jnp.float32) * 0.01,
        "wi": jax.random.normal(ks[7], (H, Dexp), jnp.float32) * 0.05,
        "bi": jax.random.normal(ks[8], (1, Dexp), jnp.float32) * 0.01,
        "wo": jax.random.normal(ks[9], (Dexp, H), jnp.float32) * 0.05,
        "bo": jax.random.normal(ks[10], (1, H), jnp.float32) * 0.01,
        # LayerNorm affine
        "gamma": jnp.ones((1, H), jnp.float32),
        "beta": jnp.zeros((1, H), jnp.float32),
    }

    hidden_states = jax.random.normal(ks[11], (B, S, H), jnp.float32)
    task_embedding = jax.random.normal(ks[12], (B, Dt), jnp.float32)

    ref = reference_forward(hidden_states, task_embedding, params)

    # Parameter-derived constants are computed ONCE (hoisted out of forward).
    consts_f32 = prepare_expert_constants(params, batch_size=B,
                                          matmul_dtype=jnp.float32)
    consts_bf16 = prepare_expert_constants(params, batch_size=B,
                                           matmul_dtype=jnp.bfloat16)

    # f32-operand path (exact semantics; also the v5e-friendly dtype choice).
    out_f32 = jax.block_until_ready(
        expert_system_forward(hidden_states, task_embedding, consts_f32))
    assert out_f32.shape == (B, S, H)
    assert jnp.allclose(out_f32, ref, atol=2e-3, rtol=2e-3), \
        "f32 kernel mismatch vs reference"

    # bf16-operand path (v6e/v7x MXU rate; f32 accumulation + f32 LayerNorm).
    out_bf16 = jax.block_until_ready(
        expert_system_forward(hidden_states, task_embedding, consts_bf16))
    assert jnp.allclose(out_bf16, ref, atol=3e-2, rtol=3e-2), \
        "bf16 kernel mismatch vs reference"

    # TODO(synk): RL trainer / expert-memory / cluster-affinity / usage-stat updates
    # are stateful Python-side bookkeeping (not part of the tensor forward pass)
    # and are omitted; training-mode dropout and temperature softmax are eval-mode no-ops.
    print("KERNEL_OK")
</pallas_src>

<mosaic_0001>
module attributes {stable_mosaic.version = 11 : i64} {
  func.func @kernel(%arg0: i32, %arg1: memref<2x64xf32, #tpu.memory_space<vmem>>, %arg2: memref<16x48xf32, #tpu.memory_space<vmem>>, %arg3: memref<160x64xf32, #tpu.memory_space<vmem>>, %arg4: memref<56x32xf32, #tpu.memory_space<vmem>>, %arg5: memref<8x128xf32, #tpu.memory_space<vmem>>, %arg6: memref<16x32xf32, #tpu.memory_space<vmem>>, %arg7: memref<48x32xf32, #tpu.memory_space<vmem>>) attributes {dimension_semantics = [#tpu.dimension_semantics<arbitrary>], iteration_bounds = array<i64: 1>, scalar_prefetch = 0 : i64, scratch_operands = 1 : i64, tpu.core_type = #tpu.core_type<tc>, window_params = [{pipeline_mode = #tpu.pipeline_mode<synchronous>, transform_indices = @transform_0, window_bounds = array<i64: 2, 64>}, {pipeline_mode = #tpu.pipeline_mode<synchronous>, transform_indices = @transform_1, window_bounds = array<i64: 16, 48>}, {pipeline_mode = #tpu.pipeline_mode<synchronous>, transform_indices = @transform_2, window_bounds = array<i64: 160, 64>}, {pipeline_mode = #tpu.pipeline_mode<synchronous>, transform_indices = @transform_3, window_bounds = array<i64: 56, 32>}, {pipeline_mode = #tpu.pipeline_mode<synchronous>, transform_indices = @transform_4, window_bounds = array<i64: 8, 128>}, {pipeline_mode = #tpu.pipeline_mode<synchronous>, transform_indices = @transform_5, window_bounds = array<i64: 16, 32>}]} {
    %c0 = arith.constant 0 : index
    %c0_0 = arith.constant 0 : index
    %0 = vector.load %arg5[%c0, %c0_0] : memref<8x128xf32, #tpu.memory_space<vmem>>, vector<1x64xf32>
    %c1 = arith.constant 1 : index
    %c0_1 = arith.constant 0 : index
    %1 = vector.load %arg5[%c1, %c0_1] : memref<8x128xf32, #tpu.memory_space<vmem>>, vector<1x32xf32>
    %c2 = arith.constant 2 : index
    %c0_2 = arith.constant 0 : index
    %2 = vector.load %arg5[%c2, %c0_2] : memref<8x128xf32, #tpu.memory_space<vmem>>, vector<1x8xf32>
    %c3 = arith.constant 3 : index
    %c0_3 = arith.constant 0 : index
    %3 = vector.load %arg5[%c3, %c0_3] : memref<8x128xf32, #tpu.memory_space<vmem>>, vector<1x32xf32>
    %c4 = arith.constant 4 : index
    %c0_4 = arith.constant 0 : index
    %4 = vector.load %arg5[%c4, %c0_4] : memref<8x128xf32, #tpu.memory_space<vmem>>, vector<1x32xf32>
    %c5 = arith.constant 5 : index
    %c0_5 = arith.constant 0 : index
    %5 = vector.load %arg5[%c5, %c0_5] : memref<8x128xf32, #tpu.memory_space<vmem>>, vector<1x32xf32>
    %c0_6 = arith.constant 0 : index
    %c0_7 = arith.constant 0 : index
    %6 = vector.load %arg1[%c0_6, %c0_7] : memref<2x64xf32, #tpu.memory_space<vmem>>, vector<2x64xf32>
    %c0_8 = arith.constant 0 : index
    %c0_9 = arith.constant 0 : index
    %7 = vector.load %arg3[%c0_8, %c0_9] : memref<160x64xf32, #tpu.memory_space<vmem>>, vector<64x64xf32>
    %cst = arith.constant dense<0.000000e+00> : vector<2x64xf32>
    %8 = tpu.matmul %6, %7, %cst {dimension_numbers = #tpu.dot_dimension_numbers<[1], [0], [0], [1], [0, 0, 1, 1], [], []>} : vector<2x64xf32>, vector<64x64xf32>, vector<2x64xf32> -> vector<2x64xf32>
    %9 = vector.broadcast %0 : vector<1x64xf32> to vector<2x64xf32>
    %10 = arith.addf %8, %9 : vector<2x64xf32>
    %cst_10 = arith.constant 0.000000e+00 : f32
    %11 = vector.broadcast %cst_10 : f32 to vector<2x64xf32>
    %12 = arith.maximumf %10, %11 : vector<2x64xf32>
    %c64 = arith.constant 64 : index
    %c0_11 = arith.constant 0 : index
    %13 = vector.load %arg3[%c64, %c0_11] : memref<160x64xf32, #tpu.memory_space<vmem>>, vector<64x32xf32>
    %cst_12 = arith.constant dense<0.000000e+00> : vector<2x32xf32>
    %14 = tpu.matmul %12, %13, %cst_12 {dimension_numbers = #tpu.dot_dimension_numbers<[1], [0], [0], [1], [0, 0, 1, 1], [], []>} : vector<2x64xf32>, vector<64x32xf32>, vector<2x32xf32> -> vector<2x32xf32>
    %15 = vector.broadcast %1 : vector<1x32xf32> to vector<2x32xf32>
    %16 = arith.addf %14, %15 : vector<2x32xf32>
    %cst_13 = arith.constant 0.000000e+00 : f32
    %17 = vector.broadcast %cst_13 : f32 to vector<2x32xf32>
    %18 = arith.maximumf %16, %17 : vector<2x32xf32>
    %c128 = arith.constant 128 : index
    %c0_14 = arith.constant 0 : index
    %19 = vector.load %arg3[%c128, %c0_14] : memref<160x64xf32, #tpu.memory_space<vmem>>, vector<32x8xf32>
    %cst_15 = arith.constant dense<0.000000e+00> : vector<2x8xf32>
    %20 = tpu.matmul %18, %19, %cst_15 {dimension_numbers = #tpu.dot_dimension_numbers<[1], [0], [0], [1], [0, 0, 1, 1], [], []>} : vector<2x32xf32>, vector<32x8xf32>, vector<2x8xf32> -> vector<2x8xf32>
    %21 = vector.broadcast %2 : vector<1x8xf32> to vector<2x8xf32>
    %22 = arith.addf %20, %21 : vector<2x8xf32>
    %cst_16 = arith.constant dense<0xFF800000> : vector<2xf32>
    %23 = vector.multi_reduction <maximumf>, %22, %cst_16 [1] : vector<2x8xf32> to vector<2xf32>
    %24 = vector.shape_cast %23 : vector<2xf32> to vector<2x1xf32>
    %25 = vector.broadcast %24 : vector<2x1xf32> to vector<2x8xf32>
    %26 = arith.subf %22, %25 : vector<2x8xf32>
    %27 = math.exp %26 : vector<2x8xf32>
    %cst_17 = arith.constant dense<0.000000e+00> : vector<2xf32>
    %28 = vector.multi_reduction <add>, %27, %cst_17 [1] : vector<2x8xf32> to vector<2xf32>
    %29 = vector.shape_cast %28 : vector<2xf32> to vector<2x1xf32>
    %30 = tpu.reciprocal %29 {approx = true} : vector<2x1xf32> -> vector<2x1xf32>
    %31 = vector.broadcast %30 : vector<2x1xf32> to vector<2x8xf32>
    %32 = arith.mulf %27, %31 : vector<2x8xf32>
    %c48 = arith.constant 48 : index
    %c0_18 = arith.constant 0 : index
    %33 = vector.load %arg4[%c48, %c0_18] : memref<56x32xf32, #tpu.memory_space<vmem>>, vector<8x32xf32>
    %cst_19 = arith.constant dense<0.000000e+00> : vector<2x32xf32>
    %34 = tpu.matmul %32, %33, %cst_19 {dimension_numbers = #tpu.dot_dimension_numbers<[1], [0], [0], [1], [0, 0, 1, 1], [], []>} : vector<2x8xf32>, vector<8x32xf32>, vector<2x32xf32> -> vector<2x32xf32>
    %c0_20 = arith.constant 0 : index
    %c0_21 = arith.constant 0 : index
    %35 = vector.load %arg4[%c0_20, %c0_21] : memref<56x32xf32, #tpu.memory_space<vmem>>, vector<48x32xf32>
    %c0_22 = arith.constant 0 : index
    %c0_23 = arith.constant 0 : index
    %36 = vector.load %arg7[%c0_22, %c0_23] : memref<48x32xf32, #tpu.memory_space<vmem>>, vector<48x32xf32>
    tpu.vector_store %arg7[%c0_22, %c0_23], %35 {strides = array<i32>} : memref<48x32xf32, #tpu.memory_space<vmem>>, vector<48x32xf32>,
    %c32 = arith.constant 32 : index
    %c0_24 = arith.constant 0 : index
    %37 = vector.load %arg7[%c32, %c0_24] : memref<48x32xf32, #tpu.memory_space<vmem>>, vector<2x32xf32>
    tpu.vector_store %arg7[%c32, %c0_24], %34 {strides = array<i32>} : memref<48x32xf32, #tpu.memory_space<vmem>>, vector<2x32xf32>,
    %c0_25 = arith.constant 0 : index
    %c0_26 = arith.constant 0 : index
    %38 = vector.load %arg2[%c0_25, %c0_26] : memref<16x48xf32, #tpu.memory_space<vmem>>, vector<16x48xf32>
    %c0_27 = arith.constant 0 : index
    %c0_28 = arith.constant 0 : index
    %39 = vector.load %arg7[%c0_27, %c0_28] : memref<48x32xf32, #tpu.memory_space<vmem>>, vector<48x32xf32>
    %cst_29 = arith.constant dense<0.000000e+00> : vector<16x32xf32>
    %40 = tpu.matmul %38, %39, %cst_29 {dimension_numbers = #tpu.dot_dimension_numbers<[1], [0], [0], [1], [0, 0, 1, 1], [], []>} : vector<16x48xf32>, vector<48x32xf32>, vector<16x32xf32> -> vector<16x32xf32>
    %41 = vector.broadcast %3 : vector<1x32xf32> to vector<16x32xf32>
    %42 = arith.addf %40, %41 : vector<16x32xf32>
    %43 = vector.extract_strided_slice %38 {offsets = [0, 0], sizes = [16, 32], strides = [1, 1]} : vector<16x48xf32> to vector<16x32xf32>
    %44 = arith.addf %43, %42 : vector<16x32xf32>
    %cst_30 = arith.constant dense<0.000000e+00> : vector<16xf32>
    %45 = vector.multi_reduction <add>, %44, %cst_30 [1] : vector<16x32xf32> to vector<16xf32>
    %46 = vector.shape_cast %45 : vector<16xf32> to vector<16x1xf32>
    %cst_31 = arith.constant 3.200000e+01 : f32
    %47 = vector.broadcast %cst_31 : f32 to vector<16x1xf32>
    %48 = arith.divf %46, %47 : vector<16x1xf32>
    %49 = vector.broadcast %48 : vector<16x1xf32> to vector<16x32xf32>
    %50 = arith.subf %44, %49 : vector<16x32xf32>
    %51 = arith.mulf %50, %50 : vector<16x32xf32>
    %cst_32 = arith.constant dense<0.000000e+00> : vector<16xf32>
    %52 = vector.multi_reduction <add>, %51, %cst_32 [1] : vector<16x32xf32> to vector<16xf32>
    %53 = vector.shape_cast %52 : vector<16xf32> to vector<16x1xf32>
    %cst_33 = arith.constant 3.200000e+01 : f32
    %54 = vector.broadcast %cst_33 : f32 to vector<16x1xf32>
    %55 = arith.divf %53, %54 : vector<16x1xf32>
    %cst_34 = arith.constant 9.99999974E-6 : f32
    %56 = vector.broadcast %cst_34 : f32 to vector<16x1xf32>
    %57 = arith.addf %55, %56 : vector<16x1xf32>
    %58 = math.rsqrt %57 : vector<16x1xf32>
    %59 = vector.broadcast %58 : vector<16x1xf32> to vector<16x32xf32>
    %60 = arith.mulf %50, %59 : vector<16x32xf32>
    %61 = vector.broadcast %4 : vector<1x32xf32> to vector<16x32xf32>
    %62 = arith.mulf %60, %61 : vector<16x32xf32>
    %63 = vector.broadcast %5 : vector<1x32xf32> to vector<16x32xf32>
    %64 = arith.addf %62, %63 : vector<16x32xf32>
    %c0_35 = arith.constant 0 : index
    %c0_36 = arith.constant 0 : index
    %65 = vector.load %arg6[%c0_35, %c0_36] : memref<16x32xf32, #tpu.memory_space<vmem>>, vector<16x32xf32>
    tpu.vector_store %arg6[%c0_35, %c0_36], %64 {strides = array<i32>} : memref<16x32xf32, #tpu.memory_space<vmem>>, vector<16x32xf32>,
    return
  }
  func.func @transform_0(%arg0: i32) -> (i32, i32) {
    %c0_i32 = arith.constant 0 : i32
    %c0_i32_0 = arith.constant 0 : i32
    %c0_i32_1 = arith.constant 0 : i32
    return %c0_i32, %c0_i32_0 : i32, i32
  }
  func.func @transform_1(%arg0: i32) -> (i32, i32) {
    %c0_i32 = arith.constant 0 : i32
    %c0_i32_0 = arith.constant 0 : i32
    %c0_i32_1 = arith.constant 0 : i32
    return %c0_i32, %c0_i32_0 : i32, i32
  }
  func.func @transform_2(%arg0: i32) -> (i32, i32) {
    %c0_i32 = arith.constant 0 : i32
    %c0_i32_0 = arith.constant 0 : i32
    %c0_i32_1 = arith.constant 0 : i32
    return %c0_i32, %c0_i32_0 : i32, i32
  }
  func.func @transform_3(%arg0: i32) -> (i32, i32) {
    %c0_i32 = arith.constant 0 : i32
    %c0_i32_0 = arith.constant 0 : i32
    %c0_i32_1 = arith.constant 0 : i32
    return %c0_i32, %c0_i32_0 : i32, i32
  }
  func.func @transform_4(%arg0: i32) -> (i32, i32) {
    %c0_i32 = arith.constant 0 : i32
    %c0_i32_0 = arith.constant 0 : i32
    %c0_i32_1 = arith.constant 0 : i32
    return %c0_i32, %c0_i32_0 : i32, i32
  }
  func.func @transform_5(%arg0: i32) -> (i32, i32) {
    %c0_i32 = arith.constant 0 : i32
    %c0_i32_0 = arith.constant 0 : i32
    %c0_i32_1 = arith.constant 0 : i32
    return %c0_i32, %c0_i32_0 : i32, i32
  }
}

</mosaic_0001>

<bundles_post_ra>
// kernel: tpu_custom_call.1
= control target key start
LH: loop header
LB: loop body
LE: loop exit
PB: predicated region body
PF: predicated region fallthrough
CT: control target
= control target key end

     0   :  { %s503_s0 = inlined_call_operand.vmem [shape: f32[2,64], index: 0, kind: input, shape index: {}]   ;;  %s504_s1 = inlined_call_operand.vmem [shape: f32[16,48], index: 1, kind: input, shape index: {}]   ;;  %s505_s2 = inlined_call_operand.vmem [shape: f32[160,64], index: 2, kind: input, shape index: {}]   ;;  %s506_s3 = inlined_call_operand.vmem [shape: f32[56,32], index: 3, kind: input, shape index: {}]   ;;  %s507_s4 = inlined_call_operand.vmem [shape: f32[8,128], index: 4, kind: input, shape index: {}]   ;;  %s508_s5 = inlined_call_operand.hbm [shape: f32[16,32], index: 5, kind: output, shape index: {}]  }
   0x1   :  { %v35_v0 = vld [vmem:[%s505_s2 + $0x38] sm:$0xff]  ;;  %v34_v1 = vld [vmem:[%s505_s2 + $0x30] sm:$0xff]  ;;  %v33_v2 = vld [vmem:[%s505_s2 + $0x28] sm:$0xff] }
   0x2   :  { %49 = vmatpush.msra.mxu0 %v35_v0  ;;  %v69_v3 = vld [vmem:[%s505_s2 + $0x78] sm:$0xff]  ;;  %v68_v4 = vld [vmem:[%s505_s2 + $0x70] sm:$0xff]  ;;  %v32_v5 = vld [vmem:[%s505_s2 + $0x20] sm:$0xff] }
   0x3   :  { %v31_v6 = vld [vmem:[%s505_s2 + $0x18] sm:$0xff]  ;;  %82 = vmatpush.msra.mxu1 %v69_v3  ;;  %v67_v7 = vld [vmem:[%s505_s2 + $0x68] sm:$0xff] }
   0x4   :  { %50 = vmatpush.msra.mxu0 %v34_v1 }
   0x5   :  { %83 = vmatpush.msra.mxu1 %v68_v4 }
   0x6   :  { %51 = vmatpush.msra.mxu0 %v33_v2 }
   0x7   :  { %10 = vsyncpa [#allocation4], 0  ;;  %v66_v8 = vld [vmem:[%s505_s2 + $0x60] sm:$0xff]  ;;  %v30_v9 = vld [vmem:[%s505_s2 + $0x10] sm:$0xff]  ;;  %84 = vmatpush.msra.mxu1 %v67_v7  ;;  %vm37_vm0 = vcmask 523264   ;;  %vm100_vm1 = vcmask 261120  }
   0x8   :  { %52 = vmatpush.msra.mxu0 %v32_v5  ;;  %v65_v10 = vld [vmem:[%s505_s2 + $0x58] sm:$0xff]  ;;  %v29_v11 = vld [vmem:[%s505_s2 + $0x8] sm:$0xff]  ;;  %v28_v12 = vld [vmem:[%s505_s2] sm:$0xff]  ;;  %vm124_vm2 = vcmask 58368   ;;  %vm137_vm3 = vcmask 64512   ;;  %vm173_vm4 = vcmask 254976  }
   0x9   :  { %85 = vmatpush.msra.mxu1 %v66_v8  ;;  %v27_v13 = vld [vmem:[%s503_s0] sm:$0x3]  ;;  %v64_v14 = vld [vmem:[%s505_s2 + $0x50] sm:$0xff]  ;;  %v63_v15 = vld [vmem:[%s505_s2 + $0x48] sm:$0xff]  ;;  %vm184_vm5 = vcmask 392192   ;;  %v345_v2 = vmov 32.0  }
   0xa   :  { %53 = vmatpush.msra.mxu0 %v31_v6  ;;  %v62_v16 = vld [vmem:[%s505_s2 + $0x40] sm:$0xff]  ;;  %v98_v17 = vld [vmem:[%s505_s2 + $0x98] sm:$0xff]  ;;  %v97_v22 = vld [vmem:[%s505_s2 + $0x90] sm:$0xff]  ;;  %s346_s10 = smov [#allocation3]   ;;  %s281_s14 = sshll.u32 %s508_s5, 4  ;;  %s282_s14 = int_to_ptr.hbm [resolvable:$true] %s281_s14 }
   0xb   :  { %86 = vmatpush.msra.mxu1 %v65_v10  ;;  %116 = vmatpush.msra.mxu2 %v98_v17  ;;  %v303_v18 = vld [vmem:[%s507_s4] ss:$0 sm:$0xff]  ;;  %v96_v23 = vld [vmem:[%s505_s2 + $0x88] sm:$0xff]  ;;  %v304_v25 = vld [vmem:[%s507_s4 + $0x1] ss:$0 sm:$0xff]  ;;  %s279_s11 = sshll.u32 %s346_s10, 4  ;;  %s280_s11 = int_to_ptr.vmem [resolvable:$true] %s279_s11 }
   0xc   :  { %54 = vmatpush.msra.mxu0 %v30_v9  ;;  %v95_v24 = vld [vmem:[%s505_s2 + $0x80] sm:$0xff]  ;;  %v136_v38 = vld [vmem:[%s506_s3 + $0x30] sm:$0xff]  ;;  %v166_v42 = vld [vmem:[%s506_s3 + $0x28] sm:$0xff]  ;;  %s348_s2 = smov 8  }
   0xd   :  { %87 = vmatpush.msra.mxu1 %v64_v14  ;;  %117 = vmatpush.msra.mxu2 %v97_v22  ;;  %v305_v29 = vld [vmem:[%s507_s4 + $0x2] ss:$0 sm:$0xff]  ;;  %172 = vst.msk [vmem:[#allocation2 + $0x28] sm:$0xff] %vm100_vm1, %v166_v42  ;;  %v164_v44 = vld [vmem:[%s506_s3 + $0x18] sm:$0xff]  ;;  %v163_v45 = vld [vmem:[%s506_s3 + $0x10] sm:$0xff] }
   0xe   :  { %55 = vmatpush.msra.mxu0 %v29_v11  ;;  %v165_v43 = vld [vmem:[%s506_s3 + $0x20] sm:$0xff]  ;;  %170 = vst.msk [vmem:[#allocation2 + $0x18] sm:$0xff] %vm100_vm1, %v164_v44  ;;  %v162_v47 = vld [vmem:[%s506_s3 + $0x8] sm:$0xff] }
   0xf   :  { %88 = vmatpush.msra.mxu1 %v63_v15  ;;  %118 = vmatpush.msra.mxu2 %v96_v23  ;;  %171 = vst.msk [vmem:[#allocation2 + $0x20] sm:$0xff] %vm100_vm1, %v165_v43  ;;  %v161_v48 = vld [vmem:[%s506_s3] sm:$0xff]  ;;  %v176_v56 = vld [vmem:[%s504_s1 + $0x8] sm:$0xff] }
  0x10   :  { %56 = vmatpush.msra.mxu0 %v28_v12  ;;  %169 = vst.msk [vmem:[#allocation2 + $0x10] sm:$0xff] %vm100_vm1, %v163_v45  ;;  %v175_v55 = vld [vmem:[%s504_s1] sm:$0xff] }
  0x11   :  { %293 = vmatmul.msk.f32.vlgmr.msra.gmra.mxu0 %vm37_vm0, %v27_v13  ;;  %89 = vmatpush.msra.mxu1 %v62_v16  ;;  %168 = vst.msk [vmem:[#allocation2 + $0x8] sm:$0xff] %vm100_vm1, %v162_v47  ;;  %v306_v57 = vld [vmem:[%s507_s4 + $0x3] ss:$0 sm:$0xff] }
  0x12   :  { %119 = vmatpush.msra.mxu2 %v95_v24  ;;  %167 = vst.msk [vmem:[#allocation2] sm:$0xff] %vm100_vm1, %v161_v48 }
  0x14   :  { %156 = vmatpush.msrb.mxu2 %v136_v38  ;;  %v182_v46 = vld [vmem:[#allocation2 + $0x28] sm:$0xff] }
  0x15   :  { %201 = vmatpush.msra.mxu3 %v182_v46  ;;  %v180_v51 = vld [vmem:[#allocation2 + $0x18] sm:$0xff] }
  0x17   :  { %v179_v52 = vld [vmem:[#allocation2 + $0x10] sm:$0xff] }
  0x18   :  { %v178_v53 = vld [vmem:[#allocation2 + $0x8] sm:$0xff] }
  0x19   :  { %v177_v54 = vld [vmem:[#allocation2] sm:$0xff] }
  0x8e   :  { %v58_v19 = vpop.f32.mrf.mxu0 }
  0x8f   :  { %v59_v20 = vadd.f32 %v303_v18, %v58_v19 }
  0x91   :  { %v61_v21 = vmax.f32 %v59_v20, 0.0 }
  0x93   :  { %294 = vmatmul.msk.f32.vlgmr.msra.gmra.mxu1 %vm37_vm0, %v61_v21 }
 0x110   :  { %v91_v26 = vpop.f32.mrf.mxu1 }
 0x111   :  { %v92_v27 = vadd.f32 %v304_v25, %v91_v26 }
 0x113   :  { %v94_v28 = vmax.f32 %v92_v27, 0.0 }
 0x115   :  { %295 = vmatmul.msk.f32.vlgmr.msra.gmra.mxu2 %vm100_vm1, %v94_v28 }
 0x198   :  { %v121_v30 = vpop.f32.mrf.mxu2 }
 0x199   :  { %v122_v31 = vadd.f32 %v305_v29, %v121_v30 }
 0x19b   :  { %v125_v32 = vsel %vm124_vm2, %v122_v31, -inf }
 0x19c   :  { %126 = vmax.xlane.f32.xlu0 %v125_v32 }
 0x20f   :  { %v127_v33 = vpop.xlane.xlu0 %126 }
 0x210   :  { %v128_v34 = vsub.f32 %v122_v31, %v127_v33  ;;  %v307_v33 = vld [vmem:[%s507_s4 + $0x4] ss:$0 sm:$0xff] }
 0x212   :  { %v129_v35 = vmul.f32 1.442695, %v128_v34 }
 0x214   :  { %309 = vpow2.f32 %v129_v35 }
 0x21a   :  { %v310_v36 = vpop.eup %309 }
 0x21b   :  { %v131_v37 = vsel %vm124_vm2, %v310_v36, 0.0 }
 0x21c   :  { %132 = vadd.xlane.f32.xlu0 %v131_v37  ;;  %v308_v37 = vld [vmem:[%s507_s4 + $0x5] ss:$0 sm:$0xff]  ;;  %s347_s4 = smov 128  }
 0x28f   :  { %v133_v39 = vpop.xlane.xlu0 %132 }
 0x290   :  { %311 = vrcp.f32 %v133_v39 }
 0x291   :  { %313 = vrcp.f32 %v345_v2 }
 0x296   :  { %v312_v40 = vpop.eup %311 }
 0x297   :  { %v135_v41 = vmul.f32 %v312_v40, %v310_v36  ;;  %v314_v3 = vpop.eup %313 }
 0x298   :  { %v223_v4 = vmul.f32 32.0, %v314_v3  ;;  %vm227_vm6 = vweird.f32 %v314_v3 }
 0x299   :  { %296 = vmatmul.msk.f32.vlgmr.msrb.gmra.mxu2 %vm137_vm3, %v135_v41 }
 0x29a   :  { %v224_v5 = vsub.f32 1.0, %v223_v4 }
 0x29c   :  { %v225_v6 = vmul.f32 %v314_v3, %v224_v5 }
 0x29e   :  { %v226_v7 = vadd.f32 %v314_v3, %v225_v6 }
 0x2a0   :  { %v228_v8 = vsel %vm227_vm6, %v314_v3, %v226_v7 }
 0x31c   :  { %v158_v49 = vpop.f32.mrf.mxu2 }
 0x31d   :  { %174 = vst.msk [vmem:[#allocation2 + $0x20] sm:$0x3] %vm173_vm4, %v158_v49 }
 0x324   :  { %v181_v50 = vld [vmem:[#allocation2 + $0x20] sm:$0xff] }
 0x325   :  { %202 = vmatpush.msra.mxu3 %v181_v50 }
 0x327   :  { %203 = vmatpush.msra.mxu3 %v180_v51 }
 0x329   :  { %204 = vmatpush.msra.mxu3 %v179_v52 }
 0x32b   :  { %205 = vmatpush.msra.mxu3 %v178_v53 }
 0x32d   :  { %206 = vmatpush.msra.mxu3 %v177_v54 }
 0x32e   :  { %297 = vmatmul.msk.f32.vlgmr.msra.gmra.mxu3 %vm184_vm5, %v175_v55 }
 0x336   :  { %298 = vmatmul.msk.f32.gmra.mxu3 %vm184_vm5, %v176_v56 }
 0x3b1   :  { %v208_v58 = vpop.f32.mrf.mxu3 }
 0x3b2   :  { %v209_v59 = vadd.f32 %v306_v57, %v208_v58 }
 0x3b4   :  { %v214_v60 = vadd.f32 %v209_v59, %v175_v55 }
 0x3b6   :  { %v216_v61 = vsel %vm100_vm1, %v214_v60, 0.0 }
 0x3b7   :  { %217 = vadd.xlane.f32.xlu1 %v216_v61 }
 0x3b9   :  { %v211_v62 = vpop.f32.mrf.mxu3 }
 0x3ba   :  { %v212_v63 = vadd.f32 %v306_v57, %v211_v62 }
 0x3bc   :  { %v215_v0 = vadd.f32 %v212_v63, %v176_v56 }
 0x3be   :  { %v219_v1 = vsel %vm100_vm1, %v215_v0, 0.0 }
 0x3bf   :  { %220 = vadd.xlane.f32.xlu1 %v219_v1 }
 0x42a   :  { %v218_v9 = vpop.xlane.xlu1 %217 }
 0x42b   :  { %v229_v10 = vmul.f32 %v228_v8, %v218_v9 }
 0x42d   :  { %v231_v11 = vsub.f32 %v214_v60, %v229_v10 }
 0x42f   :  { %v233_v12 = vmul.f32 %v231_v11, %v231_v11 }
 0x431   :  { %v235_v13 = vsel %vm100_vm1, %v233_v12, 0.0 }
 0x432   :  { %236 = vadd.xlane.f32.xlu2 %v235_v13  ;;  %v221_v14 = vpop.xlane.xlu1 %220 }
 0x433   :  { %v230_v15 = vmul.f32 %v228_v8, %v221_v14 }
 0x435   :  { %v232_v16 = vsub.f32 %v215_v0, %v230_v15 }
 0x437   :  { %v234_v17 = vmul.f32 %v232_v16, %v232_v16 }
 0x439   :  { %v238_v18 = vsel %vm100_vm1, %v234_v17, 0.0 }
 0x43a   :  { %239 = vadd.xlane.f32.xlu2 %v238_v18 }
 0x4a5   :  { %v237_v19 = vpop.xlane.xlu2 %236 }
 0x4a6   :  { %v241_v20 = vmul.f32 %v237_v19, %v228_v8 }
 0x4a8   :  { %v243_v21 = vadd.f32 1e-05, %v241_v20 }
 0x4aa   :  { %315 = vrsqrt.f32 %v243_v21  ;;  %vm251_vm8 = vweird.f32 %v243_v21 }
 0x4ad   :  { %v240_v22 = vpop.xlane.xlu2 %239 }
 0x4ae   :  { %v242_v23 = vmul.f32 %v240_v22, %v228_v8 }
 0x4b0   :  { %v316_v24 = vpop.eup %315  ;;  %v244_v25 = vadd.f32 1e-05, %v242_v23 }
 0x4b1   :  { %v246_v26 = vmul.f32 %v316_v24, %v243_v21  ;;  %vm252_vm7 = vweird.f32 %v316_v24 }
 0x4b2   :  { %317 = vrsqrt.f32 %v244_v25  ;;  %vm253_vm9 = vmor %vm251_vm8, %vm252_vm7  ;;  %vm261_vm11 = vweird.f32 %v244_v25 }
 0x4b3   :  { %v247_v27 = vmul.f32 %v316_v24, %v246_v26 }
 0x4b5   :  { %v248_v28 = vmul.f32 0.5, %v247_v27 }
 0x4b7   :  { %v249_v29 = vsub.f32 1.5, %v248_v28 }
 0x4b8   :  { %v318_v30 = vpop.eup %317 }
 0x4b9   :  { %v250_v31 = vmul.f32 %v316_v24, %v249_v29  ;;  %v256_v32 = vmul.f32 %v318_v30, %v244_v25  ;;  %vm262_vm10 = vweird.f32 %v318_v30 }
 0x4ba   :  { %vm263_vm12 = vmor %vm261_vm11, %vm262_vm10 }
 0x4bb   :  { %v254_v34 = vsel %vm253_vm9, %v316_v24, %v250_v31  ;;  %v257_v35 = vmul.f32 %v318_v30, %v256_v32 }
 0x4bc   :  { %v265_v36 = vmul.f32 %v254_v34, %v231_v11 }
 0x4bd   :  { %v258_v38 = vmul.f32 0.5, %v257_v35 }
 0x4be   :  { %v268_v39 = vmul.f32 %v307_v33, %v265_v36 }
 0x4bf   :  { %v259_v40 = vsub.f32 1.5, %v258_v38 }
 0x4c0   :  { %v271_v41 = vadd.f32 %v308_v37, %v268_v39 }
 0x4c1   :  { %v260_v42 = vmul.f32 %v318_v30, %v259_v40 }
 0x4c2   :  { %273 = vst.msk [vmem:[#allocation3] sm:$0xff] %vm100_vm1, %v271_v41 }
 0x4c3   :  { %v264_v43 = vsel %vm263_vm12, %v318_v30, %v260_v42 }
 0x4c4   :  { %v266_v44 = vmul.f32 %v264_v43, %v232_v16 }
 0x4c6   :  { %v269_v45 = vmul.f32 %v307_v33, %v266_v44 }
 0x4c8   :  { %v272_v46 = vadd.f32 %v308_v37, %v269_v45 }
 0x4ca   :  { %274 = vst.msk [vmem:[#allocation3 + $0x8] sm:$0xff] %vm100_vm1, %v272_v46 }
 0x4cb   :  { %287 = dma.vmem_to_hbm [thread:$0]  %s280_s11, 256, %s282_s14, [#allocation4], %s347_s4, %s347_s4, %s348_s2  }
 0x4cc   :  { %343 = dma.done.wait [#allocation4], 256  }
 0x4cd   :  { %344 = vsyncadd [#allocation4], 4294967040 }
 0x4ce   :  { %292 = vsyncpa [#allocation4], 1 }

</bundles_post_ra>
